<compile_context>
chip_gen: v5e
topology: v5e:2x2
jax: 0.10.0
libtpu: 0.0.40
codegen_flags: <defaults>
</compile_context>

<pallas_src>
import jax
import jax.numpy as jnp
from jax.experimental import pallas as pl
from jax.experimental.pallas import tpu as pltpu


def _round_up(x, m):
    return (x + m - 1) // m * m


def _dual_matmul_kernel(a1_ref, a2_ref, w1_ref, w2_ref, o_ref):
    # Two K=32 MXU contractions accumulated in f32; the final add is a cheap
    # VPU op fully hidden under the (mem-bound) DMA pipeline.
    acc = jnp.dot(a1_ref[...], w1_ref[...], preferred_element_type=jnp.float32)
    acc = acc + jnp.dot(a2_ref[...], w2_ref[...], preferred_element_type=jnp.float32)
    o_ref[...] = acc.astype(o_ref.dtype)


def dual_matmul(act1, act2, w1, w2, *, tm=512):
    """act1 @ w1 + act2 @ w2 as one Pallas kernel, tiled over M."""
    M, K = act1.shape
    Kw, N = w1.shape
    assert K == Kw, f"contraction mismatch: {K} vs {Kw}"
    assert act2.shape == (M, K)
    assert w2.shape == (Kw, N)

    # Pick an M tile: multiple of 8 (sublane), clamped to the (padded) M so
    # tiny inputs run as a single grid step.
    tm_eff = _round_up(min(tm, _round_up(M, 8)), 8)
    Mp = _round_up(M, tm_eff)
    if Mp != M:
        pad = ((0, Mp - M), (0, 0))
        act1 = jnp.pad(act1, pad)
        act2 = jnp.pad(act2, pad)

    out = pl.pallas_call(
        _dual_matmul_kernel,
        out_shape=jax.ShapeDtypeStruct((Mp, N), jnp.float32),
        grid_spec=pl.GridSpec(
            grid=(Mp // tm_eff,),
            in_specs=[
                # Activation tiles sweep down M (last dim == full K -> legal).
                pl.BlockSpec((tm_eff, K), lambda i: (i, 0)),
                pl.BlockSpec((tm_eff, K), lambda i: (i, 0)),
                # Weights: constant block index -> VMEM-resident across steps.
                pl.BlockSpec((K, N), lambda i: (0, 0)),
                pl.BlockSpec((K, N), lambda i: (0, 0)),
            ],
            out_specs=pl.BlockSpec((tm_eff, N), lambda i: (i, 0)),
        ),
        compiler_params=pltpu.CompilerParams(
            dimension_semantics=("parallel",),
        ),
    )(act1, act2, w1, w2)
    return out[:M]


if __name__ == "__main__":
    key = jax.random.PRNGKey(0)
    k_a1, k_a2, k_w1, k_w2 = jax.random.split(key, 4)

    # PyTorch module: weights1/weights2 ~ U[0,1) of shape (32, 128).
    K, N = 32, 128
    w1 = jax.random.uniform(k_w1, (K, N), dtype=jnp.float32)
    w2 = jax.random.uniform(k_w2, (K, N), dtype=jnp.float32)

    # Small batch, deliberately not tile-aligned to exercise pad + multi-tile.
    M = 200
    act1 = jax.random.uniform(k_a1, (M, K), dtype=jnp.float32)
    act2 = jax.random.uniform(k_a2, (M, K), dtype=jnp.float32)

    out = dual_matmul(act1, act2, w1, w2, tm=128)
    out = jax.block_until_ready(out)

    # Correctness check against plain JAX reference.
    ref = act1 @ w1 + act2 @ w2
    assert out.shape == (M, N), out.shape
    assert jnp.allclose(out, ref, atol=1e-4, rtol=1e-4)

    print("KERNEL_OK")
</pallas_src>

<mosaic_0001>
module attributes {stable_mosaic.version = 11 : i64} {
  func.func @_dual_matmul_kernel(%arg0: i32, %arg1: memref<128x32xf32, #tpu.memory_space<vmem>>, %arg2: memref<128x32xf32, #tpu.memory_space<vmem>>, %arg3: memref<32x128xf32, #tpu.memory_space<vmem>>, %arg4: memref<32x128xf32, #tpu.memory_space<vmem>>, %arg5: memref<128x128xf32, #tpu.memory_space<vmem>>) attributes {dimension_semantics = [#tpu.dimension_semantics<parallel>], iteration_bounds = array<i64: 2>, scalar_prefetch = 0 : i64, scratch_operands = 0 : i64, tpu.core_type = #tpu.core_type<tc>, window_params = [{transform_indices = @transform_0, window_bounds = array<i64: 128, 32>}, {transform_indices = @transform_1, window_bounds = array<i64: 128, 32>}, {pipeline_mode = #tpu.pipeline_mode<synchronous>, transform_indices = @transform_2, window_bounds = array<i64: 32, 128>}, {pipeline_mode = #tpu.pipeline_mode<synchronous>, transform_indices = @transform_3, window_bounds = array<i64: 32, 128>}, {transform_indices = @transform_4, window_bounds = array<i64: 128, 128>}]} {
    %c0 = arith.constant 0 : index
    %c0_0 = arith.constant 0 : index
    %0 = vector.load %arg1[%c0, %c0_0] : memref<128x32xf32, #tpu.memory_space<vmem>>, vector<128x32xf32>
    %c0_1 = arith.constant 0 : index
    %c0_2 = arith.constant 0 : index
    %1 = vector.load %arg3[%c0_1, %c0_2] : memref<32x128xf32, #tpu.memory_space<vmem>>, vector<32x128xf32>
    %cst = arith.constant dense<0.000000e+00> : vector<128x128xf32>
    %2 = tpu.matmul %0, %1, %cst {dimension_numbers = #tpu.dot_dimension_numbers<[1], [0], [0], [1], [0, 0, 1, 1], [], []>} : vector<128x32xf32>, vector<32x128xf32>, vector<128x128xf32> -> vector<128x128xf32>
    %c0_3 = arith.constant 0 : index
    %c0_4 = arith.constant 0 : index
    %3 = vector.load %arg2[%c0_3, %c0_4] : memref<128x32xf32, #tpu.memory_space<vmem>>, vector<128x32xf32>
    %c0_5 = arith.constant 0 : index
    %c0_6 = arith.constant 0 : index
    %4 = vector.load %arg4[%c0_5, %c0_6] : memref<32x128xf32, #tpu.memory_space<vmem>>, vector<32x128xf32>
    %cst_7 = arith.constant dense<0.000000e+00> : vector<128x128xf32>
    %5 = tpu.matmul %3, %4, %cst_7 {dimension_numbers = #tpu.dot_dimension_numbers<[1], [0], [0], [1], [0, 0, 1, 1], [], []>} : vector<128x32xf32>, vector<32x128xf32>, vector<128x128xf32> -> vector<128x128xf32>
    %6 = arith.addf %2, %5 : vector<128x128xf32>
    %c0_8 = arith.constant 0 : index
    %c0_9 = arith.constant 0 : index
    %7 = vector.load %arg5[%c0_8, %c0_9] : memref<128x128xf32, #tpu.memory_space<vmem>>, vector<128x128xf32>
    tpu.vector_store %arg5[%c0_8, %c0_9], %6 {strides = array<i32>} : memref<128x128xf32, #tpu.memory_space<vmem>>, vector<128x128xf32>,
    return
  }
  func.func @transform_0(%arg0: i32) -> (i32, i32) {
    %c0_i32 = arith.constant 0 : i32
    %c0_i32_0 = arith.constant 0 : i32
    return %arg0, %c0_i32 : i32, i32
  }
  func.func @transform_1(%arg0: i32) -> (i32, i32) {
    %c0_i32 = arith.constant 0 : i32
    %c0_i32_0 = arith.constant 0 : i32
    return %arg0, %c0_i32 : i32, i32
  }
  func.func @transform_2(%arg0: i32) -> (i32, i32) {
    %c0_i32 = arith.constant 0 : i32
    %c0_i32_0 = arith.constant 0 : i32
    %c0_i32_1 = arith.constant 0 : i32
    return %c0_i32, %c0_i32_0 : i32, i32
  }
  func.func @transform_3(%arg0: i32) -> (i32, i32) {
    %c0_i32 = arith.constant 0 : i32
    %c0_i32_0 = arith.constant 0 : i32
    %c0_i32_1 = arith.constant 0 : i32
    return %c0_i32, %c0_i32_0 : i32, i32
  }
  func.func @transform_4(%arg0: i32) -> (i32, i32) {
    %c0_i32 = arith.constant 0 : i32
    %c0_i32_0 = arith.constant 0 : i32
    return %arg0, %c0_i32 : i32, i32
  }
}

</mosaic_0001>

<bundles_post_ra>
// kernel: tpu_custom_call.1
= control target key start
LH: loop header
LB: loop body
LE: loop exit
PB: predicated region body
PF: predicated region fallthrough
CT: control target
= control target key end

     0   :  { %9 = vsyncpa [#allocation3], 0  ;;  %s983_s0 = inlined_call_operand.vmem [shape: f32[256,32], index: 0, kind: input, shape index: {}]   ;;  %s984_s1 = inlined_call_operand.vmem [shape: f32[256,32], index: 1, kind: input, shape index: {}]   ;;  %s985_s2 = inlined_call_operand.vmem [shape: f32[32,128], index: 2, kind: input, shape index: {}]   ;;  %s986_s3 = inlined_call_operand.vmem [shape: f32[32,128], index: 3, kind: input, shape index: {}]   ;;  %s987_s4 = inlined_call_operand.hbm [shape: f32[256,128], index: 4, kind: output, shape index: {}]  }
   0x1   :  { %11 = vsyncpa [#allocation3 + $0x1], 0  ;;  %s781_s15 = smov 0   ;;  %s783_s16 = smov 0  }
   0x2   :  { %s785_s17 = smov 0   ;;  %s787_s18 = smov 0  }
   0x3 LB: > { %s802_s19 = sadd.s32 4294967295, %s752_s18   ;;  %s594_s20 = sadd.s32 4294967294, %s752_s18   ;;  %s752_s18 = sphi %s787_s18, %s993_s18   ;;  %s748_s17 = sphi %s785_s17, %s992_s17   ;;  %s744_s16 = sphi %s783_s16, %s991_s16   ;;  %s740_s15 = sphi %s781_s15, %s990_s15  }
   0x4   : > { %s806_s21 = sadd.s32 1, %s752_s18   ;;  %s118_s22 = sadd.s32 1, %s748_s17 }
   0x5   : > { %s115_s23 = ssub.s32 %s752_s18, %s806_s21  ;;  %p128_p0 = scmp.ne.s32.totalorder %s748_s17, %s744_s16 }
   0x6   : > { %p116_p1 = scmp.eq.s32.totalorder %s115_s23, 0  ;;  %p129_p2 = scmp.eq.s32.totalorder %s802_s19, 1 }
   0x7   : > { %p134_p3 = scmp.ne.s32.totalorder %s744_s16, %s740_s15  ;;  %p135_p4 = scmp.eq.s32.totalorder %s594_s20, 1 }
   0x8   : > { %s817_s24 = scalar_select %p116_p1, %s748_s17, %s118_s22  }
   0x9   : > { %p819_p5 = por %p129_p2, %p128_p0  ;;  %p823_p6 = por %p135_p4, %p134_p3 }
   0xa   : > { %p597_p7 = scmp.ge.s32.totalorder %s752_s18, 1  ;;  %p177_p8 = scmp.lt.s32.totalorder %s752_s18, 3 }
   0xc   : > { %p178_p9 = pnand %p597_p7, %p177_p8 }
   0xd   : > { %s599_s7 = sshll.u32 (!%p178_p9), %s802_s19, 4  ;;  %s640_s11 = sshll.u32 (!%p178_p9), %s802_s19, 7 }
   0xe   : > { %181 = sbr.rel (%p178_p9) target bundleno = 222 (0xde), region = 36  ;;  %p209_p10 = scmp.lt.s32.totalorder (!%p178_p9), %s599_s7, 31 }
   0xf   : > { %s516_s14 = scalar_lea.hbm (!%p178_p9), %s987_s4, %s640_s11 }
  0x10   : > { %s519_s22 = sshll.u32 (!%p178_p9), %s516_s14, 4  ;;  %s520_s22 = int_to_ptr.hbm [resolvable:$true] %s519_s22 }
  0x11   : > { %s704_s23 = sshra.s32 (!%p178_p9), %s520_s22, 4  ;;  %s705_s23 = int_to_ptr.hbm [resolvable:$true] %s704_s23 }
  0x12   : > { %p711_p0 = scmp.lt.s32.totalorder (!%p178_p9), %s705_s23, %s987_s4 }
  0x13   : > { %v260_v0 = vld [vmem:[%s986_s3 + $0x18] sm:$0xff]  ;;  %v259_v2 = vld [vmem:[%s986_s3 + $0x10] sm:$0xff]  ;;  %v258_v4 = vld [vmem:[%s986_s3 + $0x8] sm:$0xff]  ;;  %s995_s7 = smov (!%p209_p10, %s599_s7), 31  ;;  %vm261_vm0 = vcmask 261120  }
  0x14   : > { %v240_v1 = vld [vmem:[%s985_s2 + $0x18] sm:$0xff]  ;;  %641 = vmatpush.msra.mxu2 %v260_v0  ;;  %v239_v3 = vld [vmem:[%s985_s2 + $0x10] sm:$0xff]  ;;  %v238_v5 = vld [vmem:[%s985_s2 + $0x8] sm:$0xff]  ;;  %322 = vmatpush.msra.mxu0 %v260_v0  ;;  %s600_s27 = sshll.u32 %s995_s7, 3  ;;  %s205_s7 = sand.u32 1, %s744_s16  }
  0x15   : > { %645 = vmatpush.msra.mxu3 %v240_v1  ;;  %435 = vmatpush.msra.mxu1 %v240_v1  ;;  %v257_v6 = vld [vmem:[%s986_s3] sm:$0xff]  ;;  %s857_s30 = scalar_lea.vmem %s984_s1, %s600_s27  ;;  %s862_s8 = scalar_lea.vmem %s983_s0, %s600_s27 }
  0x16   : > { %642 = vmatpush.msra.mxu2 %v259_v2  ;;  %v237_v7 = vld [vmem:[%s985_s2] sm:$0xff]  ;;  %323 = vmatpush.msra.mxu0 %v259_v2  ;;  %v250_v12 = vld [vmem:[%s857_s30 + $0x48] sm:$0xff]  ;;  %v251_v16 = vld [vmem:[%s857_s30 + $0x50] sm:$0xff]  ;;  %s598_s9 = sshll.u32 %s205_s7, 7  ;;  %s505_s19 = scalar_lea.sflag [#allocation3], %s205_s7 }
  0x17   : > { %646 = vmatpush.msra.mxu3 %v239_v3  ;;  %436 = vmatpush.msra.mxu1 %v239_v3  ;;  %v249_v8 = vld [vmem:[%s857_s30 + $0x40] sm:$0xff]  ;;  %v230_v13 = vld [vmem:[%s862_s8 + $0x48] sm:$0xff]  ;;  %v231_v17 = vld [vmem:[%s862_s8 + $0x50] sm:$0xff]  ;;  %s931_s10 = scalar_lea.vmem [#allocation2], %s598_s9  ;;  %s706_s27 = scalar_lea.hbm %s705_s23, 128 }
  0x18   : > { %643 = vmatpush.msra.mxu2 %v258_v4  ;;  %324 = vmatpush.msra.mxu0 %v258_v4  ;;  %v229_v9 = vld [vmem:[%s862_s8 + $0x40] sm:$0xff]  ;;  %v242_v14 = vld [vmem:[%s857_s30 + $0x8] sm:$0xff]  ;;  %v243_v18 = vld [vmem:[%s857_s30 + $0x10] sm:$0xff]  ;;  %s517_s20 = sshll.u32 %s931_s10, 4  ;;  %p707_p11 = scmp.ne.s32.totalorder %s705_s23, %s706_s27  ;;  %s518_s20 = int_to_ptr.vmem [resolvable:$true] %s517_s20 }
  0x19   : > { %647 = vmatpush.msra.mxu3 %v238_v5  ;;  %437 = vmatpush.msra.mxu1 %v238_v5  ;;  %v241_v10 = vld [vmem:[%s857_s30] sm:$0xff]  ;;  %v222_v15 = vld [vmem:[%s862_s8 + $0x8] sm:$0xff]  ;;  %v223_v19 = vld [vmem:[%s862_s8 + $0x10] sm:$0xff] }
  0x1a   : > { %644 = vmatpush.msra.mxu2 %v257_v6  ;;  %v221_v11 = vld [vmem:[%s862_s8] sm:$0xff]  ;;  %325 = vmatpush.msra.mxu0 %v257_v6  ;;  %v252_v20 = vld [vmem:[%s857_s30 + $0x58] sm:$0xff]  ;;  %v254_v28 = vld [vmem:[%s857_s30 + $0x68] sm:$0xff]  ;;  %p708_p12 = pnand %p707_p11, %p819_p5 }
  0x1b   : > { %648 = vmatpush.msra.mxu3 %v237_v7  ;;  %611 = vmatmul.msk.f32.vlgmr.msra.gmra.mxu2 %vm261_vm0, %v249_v8  ;;  %v232_v21 = vld [vmem:[%s862_s8 + $0x58] sm:$0xff]  ;;  %v253_v24 = vld [vmem:[%s857_s30 + $0x60] sm:$0xff]  ;;  %v234_v29 = vld [vmem:[%s862_s8 + $0x68] sm:$0xff] }
  0x1c   : > { %627 = vmatmul.msk.f32.vlgmr.msra.gmra.mxu3 %vm261_vm0, %v229_v9  ;;  %438 = vmatpush.msra.mxu1 %v237_v7  ;;  %v244_v22 = vld [vmem:[%s857_s30 + $0x18] sm:$0xff]  ;;  %v233_v25 = vld [vmem:[%s862_s8 + $0x60] sm:$0xff]  ;;  %v246_v30 = vld [vmem:[%s857_s30 + $0x28] sm:$0xff]  ;;  %p709_p13 = pneg %p708_p12 }
  0x1d   : > { %603 = vmatmul.msk.f32.vlgmr.msra.gmra.mxu0 %vm261_vm0, %v241_v10  ;;  %619 = vmatmul.msk.f32.vlgmr.msra.gmra.mxu1 %vm261_vm0, %v221_v11  ;;  %v224_v23 = vld [vmem:[%s862_s8 + $0x18] sm:$0xff]  ;;  %v245_v26 = vld [vmem:[%s857_s30 + $0x20] sm:$0xff]  ;;  %v226_v31 = vld [vmem:[%s862_s8 + $0x28] sm:$0xff] }
  0x1e   : > { %v225_v27 = vld [vmem:[%s862_s8 + $0x20] sm:$0xff]  ;;  %v255_v32 = vld [vmem:[%s857_s30 + $0x70] sm:$0xff]  ;;  %v256_v36 = vld [vmem:[%s857_s30 + $0x78] sm:$0xff] }
  0x1f   : > { %v235_v33 = vld [vmem:[%s862_s8 + $0x70] sm:$0xff]  ;;  %v236_v37 = vld [vmem:[%s862_s8 + $0x78] sm:$0xff] }
  0x20   : > { %v247_v34 = vld [vmem:[%s857_s30 + $0x30] sm:$0xff]  ;;  %v248_v38 = vld [vmem:[%s857_s30 + $0x38] sm:$0xff]  ;;  %s710_s30 = scalar_lea.hbm %s987_s4, 256 }
  0x21   : > { %v227_v35 = vld [vmem:[%s862_s8 + $0x30] sm:$0xff]  ;;  %v228_v39 = vld [vmem:[%s862_s8 + $0x38] sm:$0xff]  ;;  %p712_p1 = scmp.lt.s32.totalorder %s710_s30, %s706_s27 }
  0x23   : > { %612 = vmatmul.msk.f32.gmra.mxu2 %vm261_vm0, %v250_v12  ;;  %p713_p2 = por %p712_p1, %p711_p0 }
  0x24   : > { %628 = vmatmul.msk.f32.gmra.mxu3 %vm261_vm0, %v230_v13 }
  0x25   : > { %604 = vmatmul.msk.f32.gmra.mxu0 %vm261_vm0, %v242_v14  ;;  %620 = vmatmul.msk.f32.gmra.mxu1 %vm261_vm0, %v222_v15  ;;  %p714_p3 = pnand %p713_p2, %p709_p13 }
  0x2b   : > { %613 = vmatmul.msk.f32.gmra.mxu2 %vm261_vm0, %v251_v16 }
  0x2c   : > { %629 = vmatmul.msk.f32.gmra.mxu3 %vm261_vm0, %v231_v17 }
  0x2d   : > { %605 = vmatmul.msk.f32.gmra.mxu0 %vm261_vm0, %v243_v18  ;;  %621 = vmatmul.msk.f32.gmra.mxu1 %vm261_vm0, %v223_v19 }
  0x33   : > { %614 = vmatmul.msk.f32.gmra.mxu2 %vm261_vm0, %v252_v20 }
  0x34   : > { %630 = vmatmul.msk.f32.gmra.mxu3 %vm261_vm0, %v232_v21 }
  0x35   : > { %606 = vmatmul.msk.f32.gmra.mxu0 %vm261_vm0, %v244_v22  ;;  %622 = vmatmul.msk.f32.gmra.mxu1 %vm261_vm0, %v224_v23 }
  0x3b   : > { %615 = vmatmul.msk.f32.gmra.mxu2 %vm261_vm0, %v253_v24 }
  0x3c   : > { %631 = vmatmul.msk.f32.gmra.mxu3 %vm261_vm0, %v233_v25 }
  0x3d   : > { %607 = vmatmul.msk.f32.gmra.mxu0 %vm261_vm0, %v245_v26  ;;  %623 = vmatmul.msk.f32.gmra.mxu1 %vm261_vm0, %v225_v27 }
  0x43   : > { %616 = vmatmul.msk.f32.gmra.mxu2 %vm261_vm0, %v254_v28 }
  0x44   : > { %632 = vmatmul.msk.f32.gmra.mxu3 %vm261_vm0, %v234_v29 }
  0x45   : > { %608 = vmatmul.msk.f32.gmra.mxu0 %vm261_vm0, %v246_v30  ;;  %624 = vmatmul.msk.f32.gmra.mxu1 %vm261_vm0, %v226_v31 }
  0x4b   : > { %617 = vmatmul.msk.f32.gmra.mxu2 %vm261_vm0, %v255_v32 }
  0x4c   : > { %633 = vmatmul.msk.f32.gmra.mxu3 %vm261_vm0, %v235_v33 }
  0x4d   : > { %609 = vmatmul.msk.f32.gmra.mxu0 %vm261_vm0, %v247_v34  ;;  %625 = vmatmul.msk.f32.gmra.mxu1 %vm261_vm0, %v227_v35 }
  0x53   : > { %618 = vmatmul.msk.f32.gmra.mxu2 %vm261_vm0, %v256_v36 }
  0x54   : > { %634 = vmatmul.msk.f32.gmra.mxu3 %vm261_vm0, %v236_v37 }
  0x55   : > { %610 = vmatmul.msk.f32.gmra.mxu0 %vm261_vm0, %v248_v38  ;;  %626 = vmatmul.msk.f32.gmra.mxu1 %vm261_vm0, %v228_v39 }
  0x9a   : > { %v327_v40 = vpop.f32.mrf.mxu0  ;;  %v440_v41 = vpop.f32.mrf.mxu1 }
  0x9b   : > { %v441_v42 = vadd.f32 %v440_v41, %v327_v40 }
  0x9d   : > { %488 = vst [vmem:[%s931_s10] sm:$0xff] %v441_v42 }
  0x9e   : > { %v351_v43 = vpop.f32.mrf.mxu2 }
  0x9f   : > { %v464_v44 = vpop.f32.mrf.mxu3 }
  0xa0   : > { %v465_v45 = vadd.f32 %v464_v44, %v351_v43 }
  0xa2   : > { %496 = vst [vmem:[%s931_s10 + $0x40] sm:$0xff] %v465_v45  ;;  %v330_v46 = vpop.f32.mrf.mxu0  ;;  %v443_v47 = vpop.f32.mrf.mxu1 }
  0xa3   : > { %v444_v48 = vadd.f32 %v443_v47, %v330_v46 }
  0xa5   : > { %489 = vst [vmem:[%s931_s10 + $0x8] sm:$0xff] %v444_v48 }
  0xa6   : > { %v354_v49 = vpop.f32.mrf.mxu2 }
  0xa7   : > { %v467_v50 = vpop.f32.mrf.mxu3 }
  0xa8   : > { %v468_v51 = vadd.f32 %v467_v50, %v354_v49 }
  0xaa   : > { %497 = vst [vmem:[%s931_s10 + $0x48] sm:$0xff] %v468_v51  ;;  %v333_v52 = vpop.f32.mrf.mxu0  ;;  %v446_v53 = vpop.f32.mrf.mxu1 }
  0xab   : > { %v447_v54 = vadd.f32 %v446_v53, %v333_v52 }
  0xad   : > { %490 = vst [vmem:[%s931_s10 + $0x10] sm:$0xff] %v447_v54 }
  0xae   : > { %v357_v55 = vpop.f32.mrf.mxu2 }
  0xaf   : > { %v470_v56 = vpop.f32.mrf.mxu3 }
  0xb0   : > { %v471_v57 = vadd.f32 %v470_v56, %v357_v55 }
  0xb2   : > { %498 = vst [vmem:[%s931_s10 + $0x50] sm:$0xff] %v471_v57  ;;  %v336_v58 = vpop.f32.mrf.mxu0  ;;  %v449_v59 = vpop.f32.mrf.mxu1 }
  0xb3   : > { %v450_v60 = vadd.f32 %v449_v59, %v336_v58 }
  0xb5   : > { %491 = vst [vmem:[%s931_s10 + $0x18] sm:$0xff] %v450_v60 }
  0xb6   : > { %v360_v61 = vpop.f32.mrf.mxu2 }
  0xb7   : > { %v473_v62 = vpop.f32.mrf.mxu3 }
  0xb8   : > { %v474_v63 = vadd.f32 %v473_v62, %v360_v61 }
  0xba   : > { %499 = vst [vmem:[%s931_s10 + $0x58] sm:$0xff] %v474_v63  ;;  %v339_v0 = vpop.f32.mrf.mxu0  ;;  %v452_v1 = vpop.f32.mrf.mxu1 }
  0xbb   : > { %v453_v2 = vadd.f32 %v452_v1, %v339_v0 }
  0xbd   : > { %492 = vst [vmem:[%s931_s10 + $0x20] sm:$0xff] %v453_v2 }
  0xbe   : > { %v363_v3 = vpop.f32.mrf.mxu2 }
  0xbf   : > { %v476_v4 = vpop.f32.mrf.mxu3 }
  0xc0   : > { %v477_v5 = vadd.f32 %v476_v4, %v363_v3 }
  0xc2   : > { %500 = vst [vmem:[%s931_s10 + $0x60] sm:$0xff] %v477_v5  ;;  %v342_v6 = vpop.f32.mrf.mxu0  ;;  %v455_v7 = vpop.f32.mrf.mxu1 }
  0xc3   : > { %v456_v8 = vadd.f32 %v455_v7, %v342_v6 }
  0xc5   : > { %493 = vst [vmem:[%s931_s10 + $0x28] sm:$0xff] %v456_v8 }
  0xc6   : > { %v366_v9 = vpop.f32.mrf.mxu2 }
  0xc7   : > { %v479_v10 = vpop.f32.mrf.mxu3 }
  0xc8   : > { %v480_v11 = vadd.f32 %v479_v10, %v366_v9 }
  0xca   : > { %501 = vst [vmem:[%s931_s10 + $0x68] sm:$0xff] %v480_v11  ;;  %v345_v12 = vpop.f32.mrf.mxu0  ;;  %v458_v13 = vpop.f32.mrf.mxu1 }
  0xcb   : > { %v459_v14 = vadd.f32 %v458_v13, %v345_v12 }
  0xcd   : > { %494 = vst [vmem:[%s931_s10 + $0x30] sm:$0xff] %v459_v14 }
  0xce   : > { %v369_v15 = vpop.f32.mrf.mxu2 }
  0xcf   : > { %v482_v16 = vpop.f32.mrf.mxu3 }
  0xd0   : > { %v483_v17 = vadd.f32 %v482_v16, %v369_v15 }
  0xd2   : > { %502 = vst [vmem:[%s931_s10 + $0x70] sm:$0xff] %v483_v17  ;;  %v348_v18 = vpop.f32.mrf.mxu0  ;;  %v461_v19 = vpop.f32.mrf.mxu1 }
  0xd3   : > { %v462_v20 = vadd.f32 %v461_v19, %v348_v18 }
  0xd5   : > { %495 = vst [vmem:[%s931_s10 + $0x38] sm:$0xff] %v462_v20 }
  0xd6   : > { %v372_v21 = vpop.f32.mrf.mxu2 }
  0xd7   : > { %v485_v22 = vpop.f32.mrf.mxu3 }
  0xd8   : > { %v486_v23 = vadd.f32 %v485_v22, %v372_v21 }
  0xda   : > { %503 = vst [vmem:[%s931_s10 + $0x78] sm:$0xff] %v486_v23 }
  0xdb   : > { %717 = shalt.err (!%p714_p3)
}
  0xdc   : > { %s754_s8 = smov 128   ;;  %s755_s7 = smov 8  }
  0xdd   : > { %649 = dma.vmem_to_hbm [thread:$0]  (%p819_p5), %s518_s20, 2048, %s520_s22, %s505_s19, %s754_s8, %s754_s8, %s755_s7  }
  0xde PF: > { %p655_p4 = scmp.ge.s32.totalorder %s752_s18, 2  ;;  %s534_s9 = sand.u32 1, %s740_s15  }
  0xdf   : > { %s535_s10 = scalar_lea.sflag [#allocation3], %s534_s9 }
  0xe0   : > { %p652_p7 = pnand %p655_p4, %p823_p6 }
  0xe2   : > { %p653_p8 = pneg %p652_p7 }
  0xe4   : > { %735 = dma.done.wait (%p653_p8), %s535_s10, 2048  }
  0xe5   : > { %737 = vsyncadd (%p653_p8), %s535_s10, 4294965248  ;;  %p14_p9 = scmp.ge.s32.totalorder %s806_s21, 4   ;;  %s990_s15 = smov %s744_s16 }
  0xe6   : > { %s991_s16 = smov %s748_s17  ;;  %s992_s17 = smov %s817_s24 }
  0xe7   : > { %s993_s18 = smov %s806_s21  ;;  %16 = sbr.rel (!%p14_p9) target bundleno = 3 (0x3), region = 74 }
  0xec   :  { %541 = vsyncpa [#allocation3], 1 }
  0xed   :  { %543 = vsyncpa [#allocation3 + $0x1], 1 }

</bundles_post_ra>
